<compile_context>
chip_gen: v7x
topology: tpu7x:2x2x1
jax: 0.10.0
libtpu: 0.0.40
codegen_flags: <defaults>
</compile_context>

<pallas_src>
import functools

import jax
import jax.numpy as jnp
from jax import lax
from jax.experimental import pallas as pl
from jax.experimental.pallas import tpu as pltpu

LANES = 128
BLOCK_BYTES = 2 * 1024 * 1024   # per-input block budget (dtype-aware tile_rows)


def _sublane_multiple(dtype) -> int:
    """Required sublane multiple for the second-to-last tile dim."""
    itemsize = jnp.dtype(dtype).itemsize
    return max(8, 32 // itemsize)   # f32 -> 8, bf16 -> 16, int8/fp8 -> 32


def _num_tensorcores() -> int:
    """Best-effort TensorCores-per-device (perf hint only, never correctness)."""
    try:
        kind = jax.devices()[0].device_kind.lower()
    except Exception:
        return 1
    if "lite" in kind or "v5e" in kind or "v6e" in kind or "v6" in kind:
        return 1              # v5e / v6e: single TensorCore per device
    if "v4" in kind or "v5p" in kind or "v7" in kind or "7x" in kind:
        return 2              # megacore / dual-TC chips
    return 1


def _mse_partial_kernel(p_ref, t_ref, o_ref, *, tile_rows, valid_rows,
                        steps_per_core, need_mask):
    c = pl.program_id(0)   # core-split axis ("parallel")
    i = pl.program_id(1)   # reduction axis ("arbitrary")

    @pl.when(i == 0)
    def _init():
        o_ref[...] = jnp.zeros_like(o_ref)

    # Per-tile upcast to f32 in VMEM; native dtype travels over HBM.
    d = p_ref[...].astype(jnp.float32) - t_ref[...].astype(jnp.float32)

    def _fold(dd):
        sq = dd * dd
        r8 = tile_rows // 8
        if r8 % 8 == 0 and r8 >= 16:
            # Split-chain reduce: 8 independent (8,128) vadd chains of depth
            # r8//8, then a 7-deep fold.  Avoids a single ~r8-deep dependent
            # add chain that could make the kernel VALU-latency-bound on v7x.
            partial = jnp.sum(sq.reshape(r8 // 8, 8, 8, LANES), axis=0)
            partial = jnp.sum(partial, axis=0)
        else:
            partial = jnp.sum(sq.reshape(r8, 8, LANES), axis=0)
        o_ref[...] += partial[None]

    if need_mask:
        # Scalar-side gate: only the ragged last tile and clamped duplicate
        # tiles pay the iota + cmp + select mask; full tiles go unmasked.
        tile_idx = c * steps_per_core + i        # logical (unclamped) tile
        row0 = tile_idx * tile_rows

        @pl.when(row0 + tile_rows <= valid_rows)
        def _full_tile():
            _fold(d)

        @pl.when(row0 + tile_rows > valid_rows)
        def _edge_tile():
            # Mask BEFORE squaring (select, not multiply) so OOB garbage,
            # including NaNs, contributes exactly zero.
            local_row = lax.broadcasted_iota(jnp.int32, (tile_rows, LANES), 0)
            _fold(jnp.where(row0 + local_row < valid_rows, d, 0.0))
    else:
        _fold(d)


def mse_loss(prediction, target):
    """Mean-squared-error loss (matches torch.nn.MSELoss() default 'mean')."""
    assert prediction.shape == target.shape, "MSELoss requires matching shapes"
    assert jnp.issubdtype(prediction.dtype, jnp.floating), "MSELoss expects float inputs"
    assert jnp.issubdtype(target.dtype, jnp.floating), "MSELoss expects float inputs"
    n_elements = prediction.size
    if n_elements == 0:
        return jnp.float32(jnp.nan)   # torch: mean over empty tensor -> nan

    # Flatten.  For native layouts whose trailing dims are already
    # (8,128)-aligned this collapse is layout-preserving; otherwise XLA
    # inserts a single relayout copy before the pallas_call.
    # TODO(synk): a native-shape kernel with lane masking would avoid that
    # relayout for small-trailing-dim NCHW inputs (e.g. H=W=16).
    p_flat = prediction.reshape(-1)
    t_flat = target.reshape(-1)

    sub = max(_sublane_multiple(prediction.dtype), _sublane_multiple(target.dtype))
    granule = LANES * sub
    n_main = (n_elements // granule) * granule

    # Ragged tail (< granule elements): plain jnp on a tiny slice instead of
    # jnp.pad-ing both full inputs through HBM.
    tail_sum = jnp.float32(0.0)
    if n_main != n_elements:
        dt = (p_flat[n_main:].astype(jnp.float32)
              - t_flat[n_main:].astype(jnp.float32))
        tail_sum = jnp.sum(dt * dt)
    if n_main == 0:
        return tail_sum / jnp.float32(n_elements)

    rows = n_main // LANES                      # multiple of `sub` (>= 8)
    if n_main == n_elements:
        p2d = p_flat.reshape(rows, LANES)
        t2d = t_flat.reshape(rows, LANES)
    else:
        p2d = p_flat[:n_main].reshape(rows, LANES)
        t2d = t_flat[:n_main].reshape(rows, LANES)

    # Dtype-aware tile sizing: ~BLOCK_BYTES per input block regardless of
    # itemsize.  Working set = 2 inputs x 2 buffers x 2 MiB = 8 MiB, safely
    # inside v5e's 16 MiB default scoped VMEM and far under v6e/v7x limits,
    # so no vmem_limit_bytes override is needed.
    itemsize = max(jnp.dtype(prediction.dtype).itemsize,
                   jnp.dtype(target.dtype).itemsize)
    budget_rows = max(sub, (BLOCK_BYTES // (LANES * itemsize)) // sub * sub)
    tile_rows = min(budget_rows, rows)          # multiple of `sub`, <= rows

    num_tiles = pl.cdiv(rows, tile_rows)
    # Leading "parallel" axis only where it helps: dual-TC chips with >= 2
    # tiles.  On 1-TC v5e/v6e it would only add a wasted duplicate-tile DMA
    # and force masking whenever num_tiles is odd.
    ncores = _num_tensorcores() if num_tiles >= 2 else 1
    steps_per_core = pl.cdiv(num_tiles, ncores)
    need_mask = (num_tiles * tile_rows != rows) or (ncores * steps_per_core != num_tiles)

    def in_map(c, i):
        # Clamp so over-allocated steps of the second core re-read the last
        # valid tile; their contribution is fully masked in the kernel.
        return (jnp.minimum(c * steps_per_core + i, num_tiles - 1), 0)

    kernel = functools.partial(
        _mse_partial_kernel,
        tile_rows=tile_rows,
        valid_rows=rows,
        steps_per_core=steps_per_core,
        need_mask=need_mask,
    )

    partials = pl.pallas_call(
        kernel,
        out_shape=jax.ShapeDtypeStruct((ncores, 8, LANES), jnp.float32),
        grid_spec=pltpu.PrefetchScalarGridSpec(
            num_scalar_prefetch=0,
            grid=(ncores, steps_per_core),
            in_specs=[
                pl.BlockSpec((tile_rows, LANES), in_map),
                pl.BlockSpec((tile_rows, LANES), in_map),
            ],
            out_specs=pl.BlockSpec((1, 8, LANES), lambda c, i: (c, 0, 0)),
        ),
        compiler_params=pltpu.CompilerParams(
            dimension_semantics=("parallel", "arbitrary"),
        ),
    )(p2d, t2d)

    # Tiny final reduce (ncores * 8 * 128 f32) + mean normalization.
    return (jnp.sum(partials) + tail_sum) / jnp.float32(n_elements)


if __name__ == "__main__":
    key = jax.random.PRNGKey(0)
    k1, k2, k3, k4, k5, k6, k7, k8 = jax.random.split(key, 8)

    # Small NCHW shapes consistent with CSRNet-style density-map prediction.
    prediction = jax.random.normal(k1, (2, 4, 16, 16), dtype=jnp.float32)
    target = jax.random.normal(k2, (2, 4, 16, 16), dtype=jnp.float32)
    loss = jax.block_until_ready(mse_loss(prediction, target))
    ref = jnp.mean((prediction - target) ** 2)
    assert jnp.allclose(loss, ref, rtol=1e-5, atol=1e-6), (loss, ref)

    # Ragged size (not a multiple of 128): exercises the plain-jnp tail path.
    p2 = jax.random.normal(k3, (1, 3, 17, 19), dtype=jnp.float32)
    t2 = jax.random.normal(k4, (1, 3, 17, 19), dtype=jnp.float32)
    loss2 = jax.block_until_ready(mse_loss(p2, t2))
    ref2 = jnp.mean((p2 - t2) ** 2)
    assert jnp.allclose(loss2, ref2, rtol=1e-5, atol=1e-6), (loss2, ref2)

    # Multi-tile input with a ragged last tile: exercises the split-chain
    # reduce, the pl.when mask gate, and (on dual-TC chips) the 2-core split.
    p3 = jax.random.normal(k5, (1, 8, 300, 256), dtype=jnp.float32)
    t3 = jax.random.normal(k6, (1, 8, 300, 256), dtype=jnp.float32)
    loss3 = jax.block_until_ready(mse_loss(p3, t3))
    ref3 = jnp.mean((p3 - t3) ** 2)
    assert jnp.allclose(loss3, ref3, rtol=1e-4, atol=1e-6), (loss3, ref3)

    # bf16 inputs: exercises the dtype-aware tile sizing + in-kernel f32 upcast.
    p4 = jax.random.normal(k7, (2, 4, 16, 16), dtype=jnp.bfloat16)
    t4 = jax.random.normal(k8, (2, 4, 16, 16), dtype=jnp.bfloat16)
    loss4 = jax.block_until_ready(mse_loss(p4, t4))
    ref4 = jnp.mean((p4.astype(jnp.float32) - t4.astype(jnp.float32)) ** 2)
    assert jnp.allclose(loss4, ref4, rtol=1e-3, atol=1e-3), (loss4, ref4)

    print("KERNEL_OK")
</pallas_src>

<mosaic_0001>
module attributes {stable_mosaic.version = 11 : i64} {
  func.func @_mse_partial_kernel(%arg0: i32, %arg1: i32, %arg2: memref<16x128xf32, #tpu.memory_space<vmem>>, %arg3: memref<16x128xf32, #tpu.memory_space<vmem>>, %arg4: memref<1x8x128xf32, #tpu.memory_space<vmem>>) attributes {dimension_semantics = [#tpu.dimension_semantics<parallel>, #tpu.dimension_semantics<arbitrary>], iteration_bounds = array<i64: 1, 1>, scalar_prefetch = 0 : i64, scratch_operands = 0 : i64, tpu.core_type = #tpu.core_type<tc>, window_params = [{transform_indices = @transform_0, window_bounds = array<i64: 16, 128>}, {transform_indices = @transform_1, window_bounds = array<i64: 16, 128>}, {transform_indices = @transform_2, window_bounds = array<i64: 1, 8, 128>}]} {
    %c0_i32 = arith.constant 0 : i32
    %0 = arith.cmpi eq, %arg1, %c0_i32 : i32
    %1 = arith.extui %0 : i1 to i32
    %c0_i32_0 = arith.constant 0 : i32
    %2 = arith.cmpi ne, %1, %c0_i32_0 : i32
    scf.if %2 {
      %cst_10 = arith.constant 0.000000e+00 : f32
      %13 = vector.broadcast %cst_10 : f32 to vector<1x8x128xf32>
      %c0_11 = arith.constant 0 : index
      %c0_12 = arith.constant 0 : index
      %c0_13 = arith.constant 0 : index
      %14 = vector.load %arg4[%c0_11, %c0_12, %c0_13] : memref<1x8x128xf32, #tpu.memory_space<vmem>>, vector<1x8x128xf32>
      tpu.vector_store %arg4[%c0_11, %c0_12, %c0_13], %13 {strides = array<i32>} : memref<1x8x128xf32, #tpu.memory_space<vmem>>, vector<1x8x128xf32>,
    } else {
    }
    %c0 = arith.constant 0 : index
    %c0_1 = arith.constant 0 : index
    %3 = vector.load %arg2[%c0, %c0_1] : memref<16x128xf32, #tpu.memory_space<vmem>>, vector<16x128xf32>
    %c0_2 = arith.constant 0 : index
    %c0_3 = arith.constant 0 : index
    %4 = vector.load %arg3[%c0_2, %c0_3] : memref<16x128xf32, #tpu.memory_space<vmem>>, vector<16x128xf32>
    %5 = arith.subf %3, %4 : vector<16x128xf32>
    %6 = arith.mulf %5, %5 : vector<16x128xf32>
    %7 = vector.shape_cast %6 : vector<16x128xf32> to vector<2x8x128xf32>
    %cst = arith.constant dense<0.000000e+00> : vector<8x128xf32>
    %8 = vector.multi_reduction <add>, %7, %cst [0] : vector<2x8x128xf32> to vector<8x128xf32>
    %c0_4 = arith.constant 0 : index
    %c0_5 = arith.constant 0 : index
    %c0_6 = arith.constant 0 : index
    %9 = vector.load %arg4[%c0_4, %c0_5, %c0_6] : memref<1x8x128xf32, #tpu.memory_space<vmem>>, vector<1x8x128xf32>
    %10 = vector.shape_cast %8 : vector<8x128xf32> to vector<1x8x128xf32>
    %11 = arith.addf %9, %10 : vector<1x8x128xf32>
    %c0_7 = arith.constant 0 : index
    %c0_8 = arith.constant 0 : index
    %c0_9 = arith.constant 0 : index
    %12 = vector.load %arg4[%c0_7, %c0_8, %c0_9] : memref<1x8x128xf32, #tpu.memory_space<vmem>>, vector<1x8x128xf32>
    tpu.vector_store %arg4[%c0_7, %c0_8, %c0_9], %11 {strides = array<i32>} : memref<1x8x128xf32, #tpu.memory_space<vmem>>, vector<1x8x128xf32>,
    return
  }
  func.func @transform_0(%arg0: i32, %arg1: i32) -> (i32, i32) {
    %c1_i32 = arith.constant 1 : i32
    %0 = arith.muli %arg0, %c1_i32 : i32
    %1 = arith.addi %0, %arg1 : i32
    %c0_i32 = arith.constant 0 : i32
    %2 = arith.minsi %1, %c0_i32 : i32
    %c0_i32_0 = arith.constant 0 : i32
    %c0_i32_1 = arith.constant 0 : i32
    return %2, %c0_i32_0 : i32, i32
  }
  func.func @transform_1(%arg0: i32, %arg1: i32) -> (i32, i32) {
    %c1_i32 = arith.constant 1 : i32
    %0 = arith.muli %arg0, %c1_i32 : i32
    %1 = arith.addi %0, %arg1 : i32
    %c0_i32 = arith.constant 0 : i32
    %2 = arith.minsi %1, %c0_i32 : i32
    %c0_i32_0 = arith.constant 0 : i32
    %c0_i32_1 = arith.constant 0 : i32
    return %2, %c0_i32_0 : i32, i32
  }
  func.func @transform_2(%arg0: i32, %arg1: i32) -> (i32, i32, i32) {
    %c0_i32 = arith.constant 0 : i32
    %c0_i32_0 = arith.constant 0 : i32
    %c0_i32_1 = arith.constant 0 : i32
    return %arg0, %c0_i32, %c0_i32_0 : i32, i32, i32
  }
}

</mosaic_0001>

<bundles_post_ra>
// kernel: tpu_custom_call.1
= control target key start
LH: loop header
LB: loop body
LE: loop exit
PB: predicated region body
PF: predicated region fallthrough
CT: control target
= control target key end

     0   :  { %7 = vsyncpa [#allocation3], 0  ;;  %s231_s0 = inlined_call_operand.hbm [shape: f32[16,128], index: 0, kind: input, shape index: {}]   ;;  %s232_s1 = inlined_call_operand.hbm [shape: f32[16,128], index: 1, kind: input, shape index: {}]   ;;  %s233_s2 = inlined_call_operand.hbm [shape: f32[1,8,128], index: 2, kind: output, shape index: {}]  }
   0x1   :  { %8 = vsyncpa [#allocation6], 0 }
   0x2   :  { %9 = vsyncpa [#allocation4], 0  ;;  %s175_s9 = smov [#allocation2]   ;;  %s103_s13 = scalar_lea.hbm %s231_s0, 256 }
   0x3   :  { %s21_s10 = sshll.u32 %s175_s9, 4  ;;  %p104_p0 = scmp.ne.s32.totalorder %s231_s0, %s103_s13  ;;  %s22_s10 = int_to_ptr.vmem [resolvable:$true] %s21_s10 }
   0x4   :  { %p107_p1 = scmp.lt.u32.totalorder %s103_s13, %s231_s0 }
   0x6   :  { %p109_p2 = pnand %p107_p1, %p104_p0 }
   0x8   :  { %112 = shalt.err (!%p109_p2)
}
   0x9   :  { %s113_s18 = scalar_lea.vmem %s22_s10, 256  ;;  %p118_p4 = scmp.lt.s32.totalorder %s22_s10, %s22_s10 }
   0xa   :  { %p114_p3 = scmp.ne.s32.totalorder %s22_s10, %s113_s18  ;;  %p119_p5 = scmp.lt.s32.totalorder %s113_s18, %s113_s18 }
   0xc   :  { %p120_p6 = por %p119_p5, %p118_p4 }
   0xe   :  { %p121_p7 = pnand %p120_p6, %p114_p3 }
  0x10   :  { %124 = shalt.err (!%p121_p7)
}
  0x11   :  { %s176_s19 = smov 128   ;;  %s177_s20 = smov 8  }
  0x12   :  { %27 = dma.hbm_to_vmem [thread:$0]  %s231_s0, 256, %s22_s10, [#allocation3], %s176_s19, %s176_s19, %s177_s20  }
  0x13   :  { %s178_s23 = smov [#allocation5]   ;;  %s125_s27 = scalar_lea.hbm %s232_s1, 256 }
  0x14   :  { %s39_s24 = sshll.u32 %s178_s23, 4  ;;  %p126_p8 = scmp.ne.s32.totalorder %s232_s1, %s125_s27  ;;  %s40_s24 = int_to_ptr.vmem [resolvable:$true] %s39_s24 }
  0x15   :  { %p129_p9 = scmp.lt.u32.totalorder %s125_s27, %s232_s1 }
  0x17   :  { %p131_p10 = pnand %p129_p9, %p126_p8 }
  0x19   :  { %134 = shalt.err (!%p131_p10)
}
  0x1a   :  { %s135_s4 = scalar_lea.vmem %s40_s24, 256  ;;  %p140_p12 = scmp.lt.s32.totalorder %s40_s24, %s40_s24 }
  0x1b   :  { %p136_p11 = scmp.ne.s32.totalorder %s40_s24, %s135_s4  ;;  %p141_p13 = scmp.lt.s32.totalorder %s135_s4, %s135_s4 }
  0x1d   :  { %p142_p0 = por %p141_p13, %p140_p12 }
  0x1f   :  { %p143_p1 = pnand %p142_p0, %p136_p11 }
  0x21   :  { %146 = shalt.err (!%p143_p1)
}
  0x22   :  { %45 = dma.hbm_to_vmem [thread:$0]  %s232_s1, 256, %s40_s24, [#allocation6], %s176_s19, %s176_s19, %s177_s20  }
  0x23   :  { %169 = dma.done.wait [#allocation3], 256  }
  0x24   :  { %170 = vsyncadd [#allocation3], 4294967040 }
  0x25   :  { %171 = dma.done.wait [#allocation6], 256  }
  0x26   :  { %172 = vsyncadd [#allocation6], 4294967040  ;;  %v65_v0 = vld [vmem:[#allocation2] sm:$0xff]  ;;  %v66_v1 = vld [vmem:[#allocation2 + $0x8] sm:$0xff]  ;;  %s179_s6 = smov [#allocation7]  }
  0x27   :  { %v67_v2 = vld [vmem:[#allocation5] sm:$0xff]  ;;  %v68_v3 = vld [vmem:[#allocation5 + $0x8] sm:$0xff]  ;;  %s83_s7 = sshll.u32 %s179_s6, 4  ;;  %s84_s7 = int_to_ptr.vmem [resolvable:$true] %s83_s7 }
  0x28   :  { %v69_v4 = vsub.f32 %v65_v0, %v67_v2  ;;  %v70_v5 = vsub.f32 %v66_v1, %v68_v3  ;;  %s147_s8 = scalar_lea.vmem %s84_s7, 128  ;;  %p152_p3 = scmp.lt.s32.totalorder %s84_s7, %s84_s7 }
  0x29   :  { %p148_p2 = scmp.ne.s32.totalorder %s84_s7, %s147_s8  ;;  %p153_p4 = scmp.lt.s32.totalorder %s147_s8, %s147_s8 }
  0x2a   :  { %v71_v6 = vmul.f32 %v69_v4, %v69_v4  ;;  %v72_v7 = vmul.f32 %v70_v5, %v70_v5 }
  0x2b   :  { %p154_p5 = por %p153_p4, %p152_p3 }
  0x2c   :  { %v73_v8 = vadd.f32 %v72_v7, %v71_v6 }
  0x2d   :  { %p155_p6 = pnand %p154_p5, %p148_p2 }
  0x2e   :  { %76 = vst [vmem:[#allocation7] sm:$0xff] %v73_v8 }
  0x2f   :  { %158 = shalt.err (!%p155_p6)
}
  0x30   :  { %s159_s10 = scalar_lea.hbm %s233_s2, 128 }
  0x31   :  { %p160_p7 = scmp.ne.s32.totalorder %s233_s2, %s159_s10  ;;  %p163_p8 = scmp.lt.u32.totalorder %s159_s10, %s233_s2 }
  0x33   :  { %p165_p9 = pnand %p163_p8, %p160_p7 }
  0x35   :  { %168 = shalt.err (!%p165_p9)
}
  0x36   :  { %86 = dma.vmem_to_hbm [thread:$0]  %s84_s7, 128, %s233_s2, [#allocation4]  }
  0x37   :  { %173 = dma.done.wait [#allocation4], 128  }
  0x38   :  { %174 = vsyncadd [#allocation4], 4294967168 }
  0x39   :  { %90 = vsyncpa [#allocation3], 1 }
  0x3a   :  { %91 = vsyncpa [#allocation6], 1 }
  0x3b   :  { %92 = vsyncpa [#allocation4], 1 }

</bundles_post_ra>
